<compile_context>
chip_gen: v5e
topology: v5e:2x2
jax: 0.10.0
libtpu: 0.0.40
codegen_flags: <defaults>
</compile_context>

<pallas_src>
import functools

import jax
import jax.numpy as jnp
from jax.experimental import pallas as pl
from jax.experimental.pallas import tpu as pltpu

_LANE = 128
_SUBLANE_MULT = 16   # clean sublane tiling for both f32 (8) and bf16 (16)
_MIB = 1024 * 1024


def _cdiv(a, b):
    return -(-a // b)


def _round_up(a, b):
    return _cdiv(a, b) * b


def _chip_config():
    """Per-generation defaults (block size, split count, VMEM budget)."""
    kind = ""
    try:
        kind = jax.devices()[0].device_kind.lower()
    except Exception:
        pass
    is_v7 = "v7" in kind
    vmem_physical = 64 * _MIB if is_v7 else 128 * _MIB
    try:
        vmem_physical = int(pltpu.get_tpu_info().vmem_capacity_bytes)
    except Exception:
        pass
    vmem_physical = max(vmem_physical, 32 * _MIB)

    if is_v7:
        # 2 TensorCores / chip: shard the leading grid axis across the cores.
        # TODO(synk): sweep pipeline_mode=pl.Buffered(3) on the inputs (costs
        # an extra 3 input blocks of VMEM; keep depth 2 by default).
        return dict(num_splits=2, block_bytes=4 * _MIB, leading_sem=pltpu.CORE_PARALLEL,
                    buffer_count=2, vmem_physical=vmem_physical)
    if "v6" in kind:
        return dict(num_splits=1, block_bytes=4 * _MIB, leading_sem=None,
                    buffer_count=2, vmem_physical=vmem_physical)
    # v5e / unknown: modest blocks (HBM is slow enough that 2 MiB steps already
    # hide the ~0.35us per-step overhead); single TensorCore.
    return dict(num_splits=1, block_bytes=2 * _MIB, leading_sem=None,
                buffer_count=2, vmem_physical=vmem_physical)


def _value_loss_kernel(v_ref, r_ref, ov_ref, o_ref, *, eps, block_rows,
                       rows_valid, steps_per_split, two_axes, needs_mask):
    if two_axes:
        i = pl.program_id(0)          # split ("parallel"/CORE_PARALLEL) axis
        j = pl.program_id(1)          # reduction ("arbitrary") axis
        step = i * steps_per_split + j
        red_idx = j
    else:
        step = pl.program_id(0)
        red_idx = step

    # (8,128) output block is the VMEM-resident accumulator across the
    # reduction axis (its block index is constant along that axis).
    @pl.when(red_idx == 0)
    def _():
        o_ref[...] = jnp.zeros_like(o_ref)

    v = v_ref[...].astype(jnp.float32)
    r = r_ref[...].astype(jnp.float32)
    ov = ov_ref[...].astype(jnp.float32)

    # values_clipped = old_values + clamp(values - old_values, -eps, eps)
    v_clipped = ov + jnp.clip(v - ov, -eps, eps)
    d1 = v - r
    d2 = v_clipped - r
    surr = jnp.maximum(d1 * d1, d2 * d2)          # pure VPU, lane-dense

    if needs_mask:
        # Zero out rows beyond the valid row count (ragged last block and/or
        # grid steps that overshoot the array on the split axis).
        row = jax.lax.broadcasted_iota(jnp.int32, surr.shape, 0)
        global_row = step * block_rows + row
        surr = jnp.where(global_row < rows_valid, surr, 0.0)

    # Fold the (block_rows,128) surrogate into the (8,128) accumulator.
    # The reshape keeps native (8,128) tiles intact (no relayout).
    o_ref[...] += surr.reshape(block_rows // 8, 8, _LANE).sum(axis=0)


def value_loss(values, reward, old_values, action_mask=None, *, eps=0.4,
               block_bytes=None, num_splits=None, buffer_count=None):
    """Pallas implementation of ValueLoss.forward. Returns a scalar (float32)."""
    del action_mask  # unused in the reference forward
    assert values.shape == reward.shape == old_values.shape
    n = int(values.size)
    assert n > 0
    itemsize = jnp.dtype(values.dtype).itemsize

    cfg = _chip_config()
    if block_bytes is None:
        block_bytes = cfg["block_bytes"]
    if num_splits is None:
        num_splits = cfg["num_splits"]
    if buffer_count is None:
        buffer_count = cfg["buffer_count"]
    leading_sem = cfg["leading_sem"] if cfg["leading_sem"] is not None else pltpu.PARALLEL
    vmem_physical = cfg["vmem_physical"]

    # ---- lane-dense (rows, 128) layout; NO block-granularity padding --------
    rows = _cdiv(n, _LANE)
    n_lane_pad = rows * _LANE
    flat = (values.reshape(-1), reward.reshape(-1), old_values.reshape(-1))
    if n_lane_pad != n:
        # Only fires when numel isn't a multiple of 128; pads <128 zeros
        # (zeros contribute exactly 0 to the surrogate sum).
        flat = tuple(jnp.pad(x, (0, n_lane_pad - n)) for x in flat)
    v2d, r2d, ov2d = (x.reshape(rows, _LANE) for x in flat)

    # ---- tiling --------------------------------------------------------------
    # Budget block rows against the f32 footprint (intermediates are f32 even
    # for bf16 inputs), keeping multiples of 16 sublanes.
    budget_item = max(itemsize, 4)
    target_rows = max(_SUBLANE_MULT,
                      (block_bytes // (_LANE * budget_item)) // _SUBLANE_MULT * _SUBLANE_MULT)
    block_rows = min(target_rows, _round_up(rows, _SUBLANE_MULT))
    steps_total = _cdiv(rows, block_rows)
    num_splits = max(1, min(int(num_splits), steps_total))
    steps_per_split = _cdiv(steps_total, num_splits)
    two_axes = num_splits > 1
    needs_mask = (steps_total * block_rows != rows) or (num_splits * steps_per_split != steps_total)

    if two_axes:
        grid = (num_splits, steps_per_split)
        last_blk = steps_total - 1
        in_map = lambda i, j: (jnp.minimum(i * steps_per_split + j, last_blk), 0)
        out_map = lambda i, j: (i, 0)
        dim_sem = (leading_sem, pltpu.ARBITRARY)
    else:
        grid = (steps_total,)
        in_map = lambda j: (j, 0)
        out_map = lambda j: (0, 0)
        dim_sem = (pltpu.ARBITRARY,)

    if buffer_count != 2:
        in_spec = pl.BlockSpec((block_rows, _LANE), in_map,
                               pipeline_mode=pl.Buffered(buffer_count))
    else:
        in_spec = pl.BlockSpec((block_rows, _LANE), in_map)
    out_spec = pl.BlockSpec((8, _LANE), out_map)

    # ---- VMEM budget ---------------------------------------------------------
    in_block_bytes = block_rows * _LANE * itemsize
    f32_block_bytes = block_rows * _LANE * 4
    est_need = (3 * buffer_count * in_block_bytes   # pipelined input buffers
                + 6 * f32_block_bytes               # elementwise intermediates (conservative)
                + 2 * 8 * _LANE * 4)                # tiny (8,128) output blocks
    vmem_cap = min(vmem_physical - 8 * _MIB, 100 * _MIB)
    vmem_limit = int(max(24 * _MIB, min(max(32 * _MIB, est_need + 8 * _MIB), vmem_cap)))

    cost = pl.CostEstimate(
        flops=10 * n,
        transcendentals=0,
        bytes_accessed=3 * n * itemsize + num_splits * 8 * _LANE * 4,
    )

    kernel = functools.partial(
        _value_loss_kernel, eps=float(eps), block_rows=block_rows,
        rows_valid=rows, steps_per_split=steps_per_split,
        two_axes=two_axes, needs_mask=needs_mask)

    partials = pl.pallas_call(
        kernel,
        out_shape=jax.ShapeDtypeStruct((num_splits * 8, _LANE), jnp.float32),
        grid_spec=pltpu.PrefetchScalarGridSpec(
            num_scalar_prefetch=0,
            grid=grid,
            in_specs=[in_spec, in_spec, in_spec],
            out_specs=out_spec,
        ),
        compiler_params=pltpu.CompilerParams(
            dimension_semantics=dim_sem,
            vmem_limit_bytes=vmem_limit,
        ),
        cost_estimate=cost,
    )(v2d, r2d, ov2d)

    # Single tiny final reduction + mean over the TRUE element count.
    return jnp.sum(partials) / jnp.float32(n)


def _value_loss_ref(values, reward, old_values, eps=0.4):
    v_clipped = old_values + jnp.clip(values - old_values, -eps, eps)
    surrogate = jnp.maximum(jnp.square(values - reward), jnp.square(v_clipped - reward))
    return surrogate.mean()


if __name__ == "__main__":
    key = jax.random.PRNGKey(0)
    k1, k2, k3 = jax.random.split(key, 3)

    # 1) lane-aligned small (batch, seq): no padding, no masking.
    B, S = 8, 256
    values = jax.random.normal(k1, (B, S), dtype=jnp.float32)
    reward = jax.random.normal(k2, (B, S), dtype=jnp.float32)
    old_values = values + 0.5 * jax.random.normal(k3, (B, S), dtype=jnp.float32)
    action_mask = jnp.ones((B, S), dtype=jnp.float32)  # unused, as in PyTorch

    loss = jax.block_until_ready(
        value_loss(values, reward, old_values, action_mask, eps=0.4))
    ref = _value_loss_ref(values, reward, old_values, eps=0.4)
    assert jnp.allclose(loss, ref, rtol=1e-5, atol=1e-5), (loss, ref)

    # 2) ragged shape (numel not a multiple of 128): lane pad + in-kernel row mask.
    B2, S2 = 3, 100
    v_b = jax.random.normal(k1, (B2, S2), dtype=jnp.float32)
    r_b = jax.random.normal(k2, (B2, S2), dtype=jnp.float32)
    ov_b = v_b + 0.5 * jax.random.normal(k3, (B2, S2), dtype=jnp.float32)
    loss_b = jax.block_until_ready(value_loss(v_b, r_b, ov_b, eps=0.4))
    ref_b = _value_loss_ref(v_b, r_b, ov_b, eps=0.4)
    assert jnp.allclose(loss_b, ref_b, rtol=1e-5, atol=1e-5), (loss_b, ref_b)

    # 3) force the multi-step reduction + 2-way split + partial last block path.
    B3, S3 = 16, 4000
    v_c = jax.random.normal(k1, (B3, S3), dtype=jnp.float32)
    r_c = jax.random.normal(k2, (B3, S3), dtype=jnp.float32)
    ov_c = v_c + 0.5 * jax.random.normal(k3, (B3, S3), dtype=jnp.float32)
    loss_c = jax.block_until_ready(
        value_loss(v_c, r_c, ov_c, eps=0.4, block_bytes=64 * 1024, num_splits=2))
    ref_c = _value_loss_ref(v_c, r_c, ov_c, eps=0.4)
    assert jnp.allclose(loss_c, ref_c, rtol=1e-4, atol=1e-5), (loss_c, ref_c)

    print("KERNEL_OK")
</pallas_src>

<mosaic_0001>
module attributes {stable_mosaic.version = 11 : i64} {
  func.func @_value_loss_kernel(%arg0: i32, %arg1: memref<16x128xf32, #tpu.memory_space<vmem>>, %arg2: memref<16x128xf32, #tpu.memory_space<vmem>>, %arg3: memref<16x128xf32, #tpu.memory_space<vmem>>, %arg4: memref<8x128xf32, #tpu.memory_space<vmem>>) attributes {dimension_semantics = [#tpu.dimension_semantics<arbitrary>], iteration_bounds = array<i64: 1>, scalar_prefetch = 0 : i64, scratch_operands = 0 : i64, tpu.core_type = #tpu.core_type<tc>, window_params = [{transform_indices = @transform_0, window_bounds = array<i64: 16, 128>}, {transform_indices = @transform_1, window_bounds = array<i64: 16, 128>}, {transform_indices = @transform_2, window_bounds = array<i64: 16, 128>}, {pipeline_mode = #tpu.pipeline_mode<synchronous>, transform_indices = @transform_3, window_bounds = array<i64: 8, 128>}]} {
    %c0_i32 = arith.constant 0 : i32
    %0 = arith.cmpi eq, %arg0, %c0_i32 : i32
    %1 = arith.extui %0 : i1 to i32
    %c0_i32_0 = arith.constant 0 : i32
    %2 = arith.cmpi ne, %1, %c0_i32_0 : i32
    scf.if %2 {
      %cst_12 = arith.constant 0.000000e+00 : f32
      %22 = vector.broadcast %cst_12 : f32 to vector<8x128xf32>
      %c0_13 = arith.constant 0 : index
      %c0_14 = arith.constant 0 : index
      %23 = vector.load %arg4[%c0_13, %c0_14] : memref<8x128xf32, #tpu.memory_space<vmem>>, vector<8x128xf32>
      tpu.vector_store %arg4[%c0_13, %c0_14], %22 {strides = array<i32>} : memref<8x128xf32, #tpu.memory_space<vmem>>, vector<8x128xf32>,
    } else {
    }
    %c0 = arith.constant 0 : index
    %c0_1 = arith.constant 0 : index
    %3 = vector.load %arg1[%c0, %c0_1] : memref<16x128xf32, #tpu.memory_space<vmem>>, vector<16x128xf32>
    %c0_2 = arith.constant 0 : index
    %c0_3 = arith.constant 0 : index
    %4 = vector.load %arg2[%c0_2, %c0_3] : memref<16x128xf32, #tpu.memory_space<vmem>>, vector<16x128xf32>
    %c0_4 = arith.constant 0 : index
    %c0_5 = arith.constant 0 : index
    %5 = vector.load %arg3[%c0_4, %c0_5] : memref<16x128xf32, #tpu.memory_space<vmem>>, vector<16x128xf32>
    %6 = arith.subf %3, %5 : vector<16x128xf32>
    %cst = arith.constant -4.000000e-01 : f32
    %cst_6 = arith.constant 4.000000e-01 : f32
    %7 = vector.broadcast %cst : f32 to vector<16x128xf32>
    %8 = arith.maximumf %7, %6 : vector<16x128xf32>
    %9 = vector.broadcast %cst_6 : f32 to vector<16x128xf32>
    %10 = arith.minimumf %9, %8 : vector<16x128xf32>
    %11 = arith.addf %5, %10 : vector<16x128xf32>
    %12 = arith.subf %3, %4 : vector<16x128xf32>
    %13 = arith.subf %11, %4 : vector<16x128xf32>
    %14 = arith.mulf %12, %12 : vector<16x128xf32>
    %15 = arith.mulf %13, %13 : vector<16x128xf32>
    %16 = arith.maximumf %14, %15 : vector<16x128xf32>
    %c0_7 = arith.constant 0 : index
    %c0_8 = arith.constant 0 : index
    %17 = vector.load %arg4[%c0_7, %c0_8] : memref<8x128xf32, #tpu.memory_space<vmem>>, vector<8x128xf32>
    %18 = vector.shape_cast %16 : vector<16x128xf32> to vector<2x8x128xf32>
    %cst_9 = arith.constant dense<0.000000e+00> : vector<8x128xf32>
    %19 = vector.multi_reduction <add>, %18, %cst_9 [0] : vector<2x8x128xf32> to vector<8x128xf32>
    %20 = arith.addf %17, %19 : vector<8x128xf32>
    %c0_10 = arith.constant 0 : index
    %c0_11 = arith.constant 0 : index
    %21 = vector.load %arg4[%c0_10, %c0_11] : memref<8x128xf32, #tpu.memory_space<vmem>>, vector<8x128xf32>
    tpu.vector_store %arg4[%c0_10, %c0_11], %20 {strides = array<i32>} : memref<8x128xf32, #tpu.memory_space<vmem>>, vector<8x128xf32>,
    return
  }
  func.func @transform_0(%arg0: i32) -> (i32, i32) {
    %c0_i32 = arith.constant 0 : i32
    %c0_i32_0 = arith.constant 0 : i32
    return %arg0, %c0_i32 : i32, i32
  }
  func.func @transform_1(%arg0: i32) -> (i32, i32) {
    %c0_i32 = arith.constant 0 : i32
    %c0_i32_0 = arith.constant 0 : i32
    return %arg0, %c0_i32 : i32, i32
  }
  func.func @transform_2(%arg0: i32) -> (i32, i32) {
    %c0_i32 = arith.constant 0 : i32
    %c0_i32_0 = arith.constant 0 : i32
    return %arg0, %c0_i32 : i32, i32
  }
  func.func @transform_3(%arg0: i32) -> (i32, i32) {
    %c0_i32 = arith.constant 0 : i32
    %c0_i32_0 = arith.constant 0 : i32
    %c0_i32_1 = arith.constant 0 : i32
    return %c0_i32, %c0_i32_0 : i32, i32
  }
}

</mosaic_0001>

<bundles_post_ra>
// kernel: tpu_custom_call.1
= control target key start
LH: loop header
LB: loop body
LE: loop exit
PB: predicated region body
PF: predicated region fallthrough
CT: control target
= control target key end

     0   :  { %8 = vsyncpa [#allocation3], 0  ;;  %s262_s0 = inlined_call_operand.hbm [shape: f32[16,128], index: 0, kind: input, shape index: {}]   ;;  %s263_s1 = inlined_call_operand.hbm [shape: f32[16,128], index: 1, kind: input, shape index: {}]   ;;  %s264_s2 = inlined_call_operand.hbm [shape: f32[16,128], index: 2, kind: input, shape index: {}]   ;;  %s265_s3 = inlined_call_operand.hbm [shape: f32[8,128], index: 3, kind: output, shape index: {}]  }
   0x1   :  { %9 = vsyncpa [#allocation6], 0 }
   0x2   :  { %10 = vsyncpa [#allocation4], 0  ;;  %s28_s14 = sshll.u32 %s263_s1, 4  ;;  %s224_s15 = smov [#allocation5]   ;;  %s29_s14 = int_to_ptr.hbm [resolvable:$true] %s28_s14 }
   0x3   :  { %s30_s16 = sshll.u32 %s224_s15, 4  ;;  %s15_s19 = sshll.u32 %s262_s0, 4  ;;  %s31_s16 = int_to_ptr.vmem [resolvable:$true] %s30_s16  ;;  %s16_s19 = int_to_ptr.hbm [resolvable:$true] %s15_s19 }
   0x4   :  { %s225_s20 = smov 128   ;;  %s226_s21 = smov 8  }
   0x5   :  { %36 = dma.hbm_to_vmem [thread:$0]  %s29_s14, 256, %s31_s16, [#allocation6], %s225_s20, %s225_s20, %s226_s21  }
   0x6   :  { %s227_s22 = smov [#allocation2]   ;;  %s41_s26 = sshll.u32 %s264_s2, 4  ;;  %s42_s26 = int_to_ptr.hbm [resolvable:$true] %s41_s26 }
   0x7   :  { %s17_s23 = sshll.u32 %s227_s22, 4  ;;  %s228_s1 = smov [#allocation7]   ;;  %s18_s23 = int_to_ptr.vmem [resolvable:$true] %s17_s23 }
   0x8   :  { %23 = dma.hbm_to_vmem [thread:$0]  %s16_s19, 256, %s18_s23, [#allocation3], %s225_s20, %s225_s20, %s226_s21  }
   0x9   :  { %s43_s27 = sshll.u32 %s228_s1, 4  ;;  %s44_s27 = int_to_ptr.vmem [resolvable:$true] %s43_s27 }
   0xa   :  { %49 = dma.hbm_to_vmem [thread:$0]  %s42_s26, 256, %s44_s27, [#allocation6], %s225_s20, %s225_s20, %s226_s21  }
   0xb   :  { %218 = dma.done.wait [#allocation3], 256  }
   0xc   :  { %219 = vsyncadd [#allocation3], 4294967040 }
   0xd   :  { %220 = dma.done.wait [#allocation6], 512  }
   0xe   :  { %221 = vsyncadd [#allocation6], 4294966784  ;;  %v67_v0 = vld [vmem:[#allocation2] sm:$0xff]  ;;  %v68_v1 = vld [vmem:[#allocation2 + $0x8] sm:$0xff]  ;;  %s229_s0 = smov [#allocation8]   ;;  %s102_s30 = sshll.u32 %s265_s3, 4  ;;  %s103_s30 = int_to_ptr.hbm [resolvable:$true] %s102_s30 }
   0xf   :  { %v69_v2 = vld [vmem:[#allocation5] sm:$0xff]  ;;  %v70_v3 = vld [vmem:[#allocation5 + $0x8] sm:$0xff]  ;;  %v71_v4 = vld [vmem:[#allocation7] sm:$0xff]  ;;  %s100_s2 = sshll.u32 %s229_s0, 4  ;;  %s101_s2 = int_to_ptr.vmem [resolvable:$true] %s100_s2 }
  0x10   :  { %v72_v5 = vld [vmem:[#allocation7 + $0x8] sm:$0xff]  ;;  %v73_v6 = vsub.f32 %v67_v0, %v71_v4  ;;  %v81_v10 = vsub.f32 %v67_v0, %v69_v2  ;;  %v82_v11 = vsub.f32 %v68_v1, %v70_v3 }
  0x11   :  { %v74_v7 = vsub.f32 %v68_v1, %v72_v5 }
  0x12   :  { %v113_v8 = vclamps-f32 %v73_v6, 0.4  ;;  %v85_v16 = vmul.f32 %v81_v10, %v81_v10  ;;  %v86_v17 = vmul.f32 %v82_v11, %v82_v11 }
  0x13   :  { %v114_v9 = vclamps-f32 %v74_v7, 0.4 }
  0x14   :  { %v79_v12 = vadd.f32 %v113_v8, %v71_v4 }
  0x15   :  { %v80_v13 = vadd.f32 %v114_v9, %v72_v5 }
  0x16   :  { %v83_v14 = vsub.f32 %v79_v12, %v69_v2 }
  0x17   :  { %v84_v15 = vsub.f32 %v80_v13, %v70_v3 }
  0x18   :  { %v87_v18 = vmul.f32 %v83_v14, %v83_v14 }
  0x19   :  { %v88_v19 = vmul.f32 %v84_v15, %v84_v15 }
  0x1a   :  { %v89_v20 = vmax.f32 %v85_v16, %v87_v18 }
  0x1b   :  { %v90_v21 = vmax.f32 %v86_v17, %v88_v19 }
  0x1d   :  { %v92_v22 = vadd.f32 %v90_v21, %v89_v20 }
  0x1f   :  { %94 = vst [vmem:[#allocation8] sm:$0xff] %v92_v22 }
  0x20   :  { %105 = dma.vmem_to_hbm [thread:$0]  %s101_s2, 128, %s103_s30, [#allocation4]  }
  0x21   :  { %222 = dma.done.wait [#allocation4], 128  }
  0x22   :  { %223 = vsyncadd [#allocation4], 4294967168 }
  0x23   :  { %110 = vsyncpa [#allocation3], 1 }
  0x24   :  { %111 = vsyncpa [#allocation6], 1 }
  0x25   :  { %112 = vsyncpa [#allocation4], 1 }

</bundles_post_ra>
